<compile_context>
chip_gen: v7x
topology: tpu7x:2x2x1
jax: 0.10.0
libtpu: 0.0.40
codegen_flags: <defaults>
</compile_context>

<pallas_src>
import jax
import jax.numpy as jnp
from jax.experimental import pallas as pl
from jax.experimental.pallas import tpu as pltpu

_LANE = 128      # lane width (last-dim alignment for lane-dense stores)
_SUBLANE = 8     # f32 sublane (second-to-last dim alignment)


def _round_up(x, m):
    return (x + m - 1) // m * m


def _vmem_budgets():
    """Generation-aware (data_budget_bytes, vmem_limit_bytes)."""
    cap = 0
    try:
        cap = int(pltpu.get_tpu_info().vmem_capacity_bytes)
    except Exception:
        cap = 0
    if cap <= 0:
        cap = 64 * 1024 * 1024          # conservative fallback: v7x per-TC VMEM
    limit = (cap * 3) // 4              # leave Mosaic-internal scratch headroom
    budget = limit // 2                 # bytes we explicitly plan to occupy
    return budget, limit


def brain_kernel(x_ref, w1_ref, b1_ref, w2_ref, b2_ref, o_ref):
    # Hidden layer: x @ W1 + b1, ReLU  (MXU matmul, f32 accumulation; bias
    # broadcast happens once per tile).
    h = jnp.dot(x_ref[...], w1_ref[...], preferred_element_type=jnp.float32)
    h = jnp.maximum(h + b1_ref[...], 0.0)
    # Output layer: h @ W2 + b2.
    y = jnp.dot(h.astype(w2_ref.dtype), w2_ref[...],
                preferred_element_type=jnp.float32)
    o_ref[...] = (y + b2_ref[...]).astype(o_ref.dtype)


def prepare_brain_params(w1, b1, w2, b2, *, param_dtype=None):
    """One-time (cacheable) parameter prep — hoisted out of the per-call path.

    w1: [in, hidden]; b1: [hidden]; w2: [hidden, out]; b2: [out].
    Weights are stored pre-transposed relative to PyTorch's [out, in] layout,
    so the kernel computes plain x @ W + b.
    """
    in_size, hidden = w1.shape
    out_size = w2.shape[1]
    if param_dtype is not None:
        w1, b1, w2, b2 = (a.astype(param_dtype) for a in (w1, b1, w2, b2))
    dt = w1.dtype

    # Lane-dense output padding only pays off when out_size is large; tiny
    # dims keep their true width (masked vst beats 32x extra write bytes).
    out_p = _round_up(out_size, _LANE) if out_size >= 64 else out_size

    b1_p = jnp.reshape(b1, (1, hidden))
    if out_p == out_size:
        w2_p = w2
        b2_p = jnp.reshape(b2, (1, out_size))
    else:
        w2_p = jnp.zeros((hidden, out_p), dt).at[:, :out_size].set(w2)
        b2_p = jnp.zeros((1, out_p), dt).at[0, :out_size].set(jnp.reshape(b2, (-1,)))

    return dict(w1=w1, b1=b1_p, w2=w2_p, b2=b2_p,
                in_size=in_size, hidden=hidden,
                out_size=out_size, out_p=out_p)


def brain_forward(x, params, *, batch_tile=1024):
    """x: [B, in_size]; params from prepare_brain_params()."""
    B, in_size = x.shape
    assert in_size == params["in_size"], (in_size, params["in_size"])
    hidden = params["hidden"]
    out_size = params["out_size"]
    out_p = params["out_p"]
    w1, b1, w2, b2 = params["w1"], params["b1"], params["w2"], params["b2"]

    out_dtype = x.dtype
    pdt = w1.dtype
    x_in = x.astype(pdt) if x.dtype != pdt else x
    esize = jnp.dtype(pdt).itemsize

    data_budget, vmem_limit = _vmem_budgets()

    # VMEM accounting: resident weights/biases are double-buffered by Mosaic
    # even with constant index maps (count them twice); streamed x/out tiles
    # are double-buffered; the [tb, hidden]/[tb, out_p] f32 intermediates live
    # alongside them.
    weight_bytes = 2 * (in_size * hidden + hidden + hidden * out_p + out_p) * esize
    per_row_bytes = (2 * in_size + 2 * out_p) * esize + 4 * (hidden + out_p)
    avail = data_budget - weight_bytes
    if avail < _SUBLANE * per_row_bytes:
        # TODO(synk): for weights too large to stay VMEM-resident, fall back to
        # a K/N-tiled grid with an f32 accumulator scratch instead.
        raise ValueError(
            "Brain weights do not fit VMEM-resident "
            f"(need ~{weight_bytes} B of {data_budget} B budget); "
            "a K/N-tiled variant is required for this size.")

    # ---- batch tile: clamp to the real batch, round to the sublane ----------
    B8 = _round_up(max(B, 1), _SUBLANE)
    tb = min(batch_tile, avail // per_row_bytes, B8)
    tb = max(_SUBLANE, (tb // _SUBLANE) * _SUBLANE)
    # Keep >= 2 grid steps when the batch is splittable so dual-TC parts (v7x)
    # can shard the "parallel" batch axis; costs ~0.35 us elsewhere.
    if B8 // tb < 2 and B8 >= 2 * _SUBLANE:
        tb = _round_up((B8 + 1) // 2, _SUBLANE)
    B_p = _round_up(B8, tb)

    if B_p != B:
        # Padded rows produce garbage (ReLU(b1)@W2+b2) that is sliced off.
        x_in = jnp.zeros((B_p, in_size), pdt).at[:B].set(x_in)

    grid = (B_p // tb,)

    out = pl.pallas_call(
        brain_kernel,
        out_shape=jax.ShapeDtypeStruct((B_p, out_p), out_dtype),
        grid_spec=pltpu.PrefetchScalarGridSpec(
            num_scalar_prefetch=0,
            grid=grid,
            in_specs=[
                # Streamed batch tile; last dim == full array dim (no padding).
                pl.BlockSpec((tb, in_size), lambda i: (i, 0)),
                # VMEM-resident parameters (constant index maps).
                pl.BlockSpec((in_size, hidden), lambda i: (0, 0)),
                pl.BlockSpec((1, hidden), lambda i: (0, 0)),
                pl.BlockSpec((hidden, out_p), lambda i: (0, 0)),
                pl.BlockSpec((1, out_p), lambda i: (0, 0)),
            ],
            out_specs=pl.BlockSpec((tb, out_p), lambda i: (i, 0)),
        ),
        compiler_params=pltpu.CompilerParams(
            dimension_semantics=("parallel",),   # megacore / dual-TC sharding
            vmem_limit_bytes=vmem_limit,
        ),
    )(x_in, w1, b1, w2, b2)

    if B_p != B or out_p != out_size:
        out = out[:B, :out_size]
    return out


def reference_forward(x, w1, b1, w2, b2):
    h = jnp.maximum(x @ w1 + jnp.reshape(b1, (1, -1)), 0.0)
    return h @ w2 + jnp.reshape(b2, (1, -1))


if __name__ == "__main__":
    # Small shapes consistent with Brain(input_size, hidden_size, output_size).
    B, input_size, hidden_size, output_size = 8, 16, 32, 4

    key = jax.random.PRNGKey(0)
    kx, kw1, kb1, kw2, kb2 = jax.random.split(key, 5)

    # Deterministic parameter init (PyTorch nn.Linear-style uniform bound),
    # stored as [in, out] (transposed relative to PyTorch's [out, in]).
    bound1 = 1.0 / (input_size ** 0.5)
    bound2 = 1.0 / (hidden_size ** 0.5)
    w1 = jax.random.uniform(kw1, (input_size, hidden_size), jnp.float32, -bound1, bound1)
    b1 = jax.random.uniform(kb1, (hidden_size,), jnp.float32, -bound1, bound1)
    w2 = jax.random.uniform(kw2, (hidden_size, output_size), jnp.float32, -bound2, bound2)
    b2 = jax.random.uniform(kb2, (output_size,), jnp.float32, -bound2, bound2)

    x = jax.random.normal(kx, (B, input_size), jnp.float32)

    # One-time parameter prep (cache this across forward calls).
    params = prepare_brain_params(w1, b1, w2, b2)

    out = brain_forward(x, params)
    out = jax.block_until_ready(out)

    ref = reference_forward(x, w1, b1, w2, b2)
    assert out.shape == (B, output_size), out.shape
    assert jnp.allclose(out, ref, atol=1e-5, rtol=1e-5), "mismatch vs reference"

    # TODO(synk): Brain.save() (torch.save of state_dict) is host-side file
    # I/O, not part of the forward pass — intentionally not translated.
    print("KERNEL_OK")
</pallas_src>

<mosaic_0001>
module attributes {stable_mosaic.version = 11 : i64} {
  func.func @brain_kernel(%arg0: i32, %arg1: memref<8x16xf32, #tpu.memory_space<vmem>>, %arg2: memref<16x32xf32, #tpu.memory_space<vmem>>, %arg3: memref<1x32xf32, #tpu.memory_space<vmem>>, %arg4: memref<32x4xf32, #tpu.memory_space<vmem>>, %arg5: memref<1x4xf32, #tpu.memory_space<vmem>>, %arg6: memref<8x4xf32, #tpu.memory_space<vmem>>) attributes {dimension_semantics = [#tpu.dimension_semantics<parallel>], iteration_bounds = array<i64: 1>, scalar_prefetch = 0 : i64, scratch_operands = 0 : i64, tpu.core_type = #tpu.core_type<tc>, window_params = [{transform_indices = @transform_0, window_bounds = array<i64: 8, 16>}, {pipeline_mode = #tpu.pipeline_mode<synchronous>, transform_indices = @transform_1, window_bounds = array<i64: 16, 32>}, {pipeline_mode = #tpu.pipeline_mode<synchronous>, transform_indices = @transform_2, window_bounds = array<i64: 1, 32>}, {pipeline_mode = #tpu.pipeline_mode<synchronous>, transform_indices = @transform_3, window_bounds = array<i64: 32, 4>}, {pipeline_mode = #tpu.pipeline_mode<synchronous>, transform_indices = @transform_4, window_bounds = array<i64: 1, 4>}, {transform_indices = @transform_5, window_bounds = array<i64: 8, 4>}]} {
    %c0 = arith.constant 0 : index
    %c0_0 = arith.constant 0 : index
    %0 = vector.load %arg1[%c0, %c0_0] : memref<8x16xf32, #tpu.memory_space<vmem>>, vector<8x16xf32>
    %c0_1 = arith.constant 0 : index
    %c0_2 = arith.constant 0 : index
    %1 = vector.load %arg2[%c0_1, %c0_2] : memref<16x32xf32, #tpu.memory_space<vmem>>, vector<16x32xf32>
    %cst = arith.constant dense<0.000000e+00> : vector<8x32xf32>
    %2 = tpu.matmul %0, %1, %cst {dimension_numbers = #tpu.dot_dimension_numbers<[1], [0], [0], [1], [0, 0, 1, 1], [], []>} : vector<8x16xf32>, vector<16x32xf32>, vector<8x32xf32> -> vector<8x32xf32>
    %c0_3 = arith.constant 0 : index
    %c0_4 = arith.constant 0 : index
    %3 = vector.load %arg3[%c0_3, %c0_4] : memref<1x32xf32, #tpu.memory_space<vmem>>, vector<1x32xf32>
    %4 = vector.broadcast %3 : vector<1x32xf32> to vector<8x32xf32>
    %5 = arith.addf %2, %4 : vector<8x32xf32>
    %cst_5 = arith.constant 0.000000e+00 : f32
    %6 = vector.broadcast %cst_5 : f32 to vector<8x32xf32>
    %7 = arith.maximumf %5, %6 : vector<8x32xf32>
    %c0_6 = arith.constant 0 : index
    %c0_7 = arith.constant 0 : index
    %8 = vector.load %arg4[%c0_6, %c0_7] : memref<32x4xf32, #tpu.memory_space<vmem>>, vector<32x4xf32>
    %cst_8 = arith.constant dense<0.000000e+00> : vector<8x4xf32>
    %9 = tpu.matmul %7, %8, %cst_8 {dimension_numbers = #tpu.dot_dimension_numbers<[1], [0], [0], [1], [0, 0, 1, 1], [], []>} : vector<8x32xf32>, vector<32x4xf32>, vector<8x4xf32> -> vector<8x4xf32>
    %c0_9 = arith.constant 0 : index
    %c0_10 = arith.constant 0 : index
    %10 = vector.load %arg5[%c0_9, %c0_10] : memref<1x4xf32, #tpu.memory_space<vmem>>, vector<1x4xf32>
    %11 = vector.broadcast %10 : vector<1x4xf32> to vector<8x4xf32>
    %12 = arith.addf %9, %11 : vector<8x4xf32>
    %c0_11 = arith.constant 0 : index
    %c0_12 = arith.constant 0 : index
    %13 = vector.load %arg6[%c0_11, %c0_12] : memref<8x4xf32, #tpu.memory_space<vmem>>, vector<8x4xf32>
    tpu.vector_store %arg6[%c0_11, %c0_12], %12 {strides = array<i32>} : memref<8x4xf32, #tpu.memory_space<vmem>>, vector<8x4xf32>,
    return
  }
  func.func @transform_0(%arg0: i32) -> (i32, i32) {
    %c0_i32 = arith.constant 0 : i32
    %c0_i32_0 = arith.constant 0 : i32
    return %arg0, %c0_i32 : i32, i32
  }
  func.func @transform_1(%arg0: i32) -> (i32, i32) {
    %c0_i32 = arith.constant 0 : i32
    %c0_i32_0 = arith.constant 0 : i32
    %c0_i32_1 = arith.constant 0 : i32
    return %c0_i32, %c0_i32_0 : i32, i32
  }
  func.func @transform_2(%arg0: i32) -> (i32, i32) {
    %c0_i32 = arith.constant 0 : i32
    %c0_i32_0 = arith.constant 0 : i32
    %c0_i32_1 = arith.constant 0 : i32
    return %c0_i32, %c0_i32_0 : i32, i32
  }
  func.func @transform_3(%arg0: i32) -> (i32, i32) {
    %c0_i32 = arith.constant 0 : i32
    %c0_i32_0 = arith.constant 0 : i32
    %c0_i32_1 = arith.constant 0 : i32
    return %c0_i32, %c0_i32_0 : i32, i32
  }
  func.func @transform_4(%arg0: i32) -> (i32, i32) {
    %c0_i32 = arith.constant 0 : i32
    %c0_i32_0 = arith.constant 0 : i32
    %c0_i32_1 = arith.constant 0 : i32
    return %c0_i32, %c0_i32_0 : i32, i32
  }
  func.func @transform_5(%arg0: i32) -> (i32, i32) {
    %c0_i32 = arith.constant 0 : i32
    %c0_i32_0 = arith.constant 0 : i32
    return %arg0, %c0_i32 : i32, i32
  }
}

</mosaic_0001>

<bundles_post_ra>
// kernel: tpu_custom_call.1
= control target key start
LH: loop header
LB: loop body
LE: loop exit
PB: predicated region body
PF: predicated region fallthrough
CT: control target
= control target key end

     0   :  { %v238_v0 = vmov 0.0|0.0   ;;  %vm239_vm0 = vmmov 0   ;;  %v240_v3 = vmov 0.0   ;;  %vm30_vm1 = vcmask 130048   ;;  %s301_s1 = inlined_call_operand.vmem [shape: f32[16,32], index: 1, kind: input, shape index: {}]   ;;  %s302_s3 = inlined_call_operand.vmem [shape: f32[32,4], index: 3, kind: input, shape index: {}]   ;;  %s303_s0 = inlined_call_operand.vmem [shape: f32[8,16], index: 0, kind: input, shape index: {}]   ;;  %s304_s2 = inlined_call_operand.vmem [shape: f32[1,32], index: 2, kind: input, shape index: {}]   ;;  %s305_s4 = inlined_call_operand.vmem [shape: f32[1,4], index: 4, kind: input, shape index: {}]   ;;  %s306_s5 = inlined_call_operand.vmem [shape: f32[8,4], index: 5, kind: output, shape index: {}]  }
   0x1   :  { %226 = vmatprep.subr.bf16.mxu0 %v238_v0  ;;  %v21_v1 = vld [vmem:[%s301_s1] sm:$0xff]  ;;  %v22_v2 = vld [vmem:[%s301_s1 + $0x8] sm:$0xff]  ;;  %212 = vmatprep.mubr.msk.f32.mxu0 %vm239_vm0, %v240_v3  ;;  %v107_v9 = vld [vmem:[%s302_s3 + $0x10] sm:$0xff]  ;;  %vm116_vm2 = vcmask 261120   ;;  %vm190_vm3 = vcmask 31744  }
   0x2   :  { %v227_v4 = vpack.c.bf16 %v22_v2, %v21_v1  ;;  %229 = vmatprep.subr.bf16.mxu1 %v238_v0  ;;  %v105_v5 = vld [vmem:[%s302_s3] sm:$0xff]  ;;  %v106_v6 = vld [vmem:[%s302_s3 + $0x8] sm:$0xff]  ;;  %223 = vmatprep.mubr.msk.f32.mxu1 %vm239_vm0, %v240_v3  ;;  %v108_v10 = vld [vmem:[%s302_s3 + $0x18] sm:$0xff] }
   0x3   :  { %v230_v7 = vpack.c.bf16 %v106_v6, %v105_v5  ;;  %v20_v8 = vld [vmem:[%s303_s0] sm:$0xff]  ;;  %v233_v11 = vpack.c.bf16 %v108_v10, %v107_v9 }
   0x4   :  { %228 = vmatpush3.bf16.msra.mxu0 %v227_v4  ;;  %v196_v12 = vld [vmem:[%s304_s2] ss:$0 sm:$0xff] }
   0x5   :  { %231 = vmatpush3.bf16.msra.mxu1 %v230_v7  ;;  %v198_v17 = vld [vmem:[%s305_s4] ss:$0 sm:$0xff] }
   0x6   :  { %232 = vmatprep.subr.bf16.mxu1 %v238_v0 }
   0x7   :  { %213 = vmatmul.mubr.msk.f32.vlgmr.msra.gmra.mrb[0].mxu0 %vm30_vm1, %v20_v8 }
   0x9   :  { %234 = vmatpush3.bf16.msra.mxu1 %v233_v11 }
  0xda   :  { %v100_v13 = vpop.f32.mrb[0].mxu0 }
  0xdb   :  { %v101_v14 = vadd.f32 %v196_v12, %v100_v13  ;;  %v214_v15 = vpop.f32.mrb[1].mxu0 }
  0xdd   :  { %v104_v16 = vmax.f32 %v101_v14, 0.0 }
  0xdf   :  { %224 = vmatmul.mubr.msk.f32.vlgmr.msra.gmra.mrb[0].mxu1 %vm116_vm2, %v104_v16 }
 0x1b2   :  { %v186_v18 = vpop.f32.mrb[0].mxu1 }
 0x1b3   :  { %v187_v19 = vadd.f32 %v198_v17, %v186_v18  ;;  %v225_v20 = vpop.f32.mrb[1].mxu1 }
 0x1b5   :  { %191 = vst.msk [vmem:[%s306_s5] sm:$0xff] %vm190_vm3, %v187_v19 }

</bundles_post_ra>
